<compile_context>
chip_gen: v7x
topology: tpu7x:2x2x1
jax: 0.10.0
libtpu: 0.0.40
codegen_flags: <defaults>
</compile_context>

<pallas_src>
import functools

import jax
import jax.numpy as jnp
from jax.experimental import pallas as pl
from jax.experimental.pallas import tpu as pltpu


_LANE = 128
_SUBLANE = 8

# Per-block VMEM footprint target, counting (8,128) sublane/lane padding.
# in + out, each double-buffered -> ~4x this = ~16 MiB of pipeline VMEM.
_TARGET_BLOCK_BYTES = 4 * 1024 * 1024
_VMEM_LIMIT_BYTES = 32 * 1024 * 1024


def _round_up(a: int, b: int) -> int:
    return -(-a // b) * b


def _znorm_kernel(wav_ref, out_ref, *, mean, std):
    # Matches PyTorch znorm exactly: (x - mean) / std.  The divide is hidden
    # behind the HBM pipeline (memory-bound op), so no reciprocal trick needed.
    out_ref[...] = (wav_ref[...] - mean) / std


def _choose_tiles(rows: int, cols: int, itemsize: int, target_bytes: int):
    """Pick (tile_rows, tile_cols) whose padded VMEM footprint ~= target_bytes.

    Block-shape legality: each tiled dim is either a multiple of (8 / 128) or
    equal to the full array dim, so ragged shapes never require padding.
    """
    col_q = _LANE if cols >= _LANE else cols            # minimal legal col tile
    padded_rows = _round_up(rows, _SUBLANE)
    rows_budget = max(_SUBLANE, target_bytes // (col_q * itemsize))
    if padded_rows <= rows_budget:
        tile_rows = rows                                # full rows dim (legal)
        padded_tile_rows = padded_rows
    else:
        tile_rows = (rows_budget // _SUBLANE) * _SUBLANE  # multiple of 8 (legal)
        padded_tile_rows = tile_rows
    cols_budget = max(col_q, target_bytes // (padded_tile_rows * itemsize))
    if cols_budget >= cols:
        tile_cols = cols                                # full cols dim (legal)
    else:
        tile_cols = max(_LANE, (cols_budget // _LANE) * _LANE)
    return tile_rows, tile_cols


def _znorm_pallas(x, mean, std, donate: bool, block_bytes: int):
    rows, cols = x.shape
    tile_r, tile_c = _choose_tiles(rows, cols, x.dtype.itemsize, block_bytes)
    grid = (pl.cdiv(rows, tile_r), pl.cdiv(cols, tile_c))
    kernel = functools.partial(_znorm_kernel, mean=float(mean), std=float(std))
    return pl.pallas_call(
        kernel,
        out_shape=jax.ShapeDtypeStruct((rows, cols), x.dtype),
        grid=grid,
        in_specs=[pl.BlockSpec((tile_r, tile_c), lambda i, j: (i, j))],
        out_specs=pl.BlockSpec((tile_r, tile_c), lambda i, j: (i, j)),
        input_output_aliases=({0: 0} if donate else {}),
        compiler_params=pltpu.CompilerParams(
            dimension_semantics=("parallel", "parallel"),
            vmem_limit_bytes=_VMEM_LIMIT_BYTES,
        ),
    )(x)


def _forward(waveform, norm_mean, norm_std, donate: bool, block_bytes: int):
    B, T = waveform.shape

    # PyTorch skips znorm unless BOTH mean and std are configured.
    if norm_mean is None or norm_std is None:
        # unsqueeze(-2) only: pure metadata, no kernel launch, no HBM traffic.
        return waveform[:, None, :]

    # TODO(synk): in a full model this single elementwise pass should ideally
    # be fused into the downstream patch-embedding kernel instead of paying a
    # dedicated HBM read+write; kept as a standalone kernel per the module spec.

    # Small batches (B < 8) would waste 8-row sublane padding in VMEM, so fold
    # a factor of T into the row axis (free, contiguous row-major reshape) to
    # fill every vreg; fall back when T has no suitable factor.
    work = waveform
    rows, cols = B, T
    if B < _SUBLANE:
        for g in range(_SUBLANE // B, 1, -1):
            if T % g == 0:
                rows, cols = B * g, T // g
                work = waveform.reshape(rows, cols)
                break

    out = _znorm_pallas(work, norm_mean, norm_std, donate, block_bytes)
    # unsqueeze(-2): (B, T) -> (B, 1, T), metadata only.
    return out.reshape(B, 1, T)


@functools.partial(jax.jit,
                   static_argnames=("norm_mean", "norm_std", "block_bytes"))
def waveform_forward(waveform, norm_mean=None, norm_std=None,
                     block_bytes=_TARGET_BLOCK_BYTES):
    """JAX/Pallas equivalent of Waveform.forward: (B, T) -> (B, 1, T)."""
    return _forward(waveform, norm_mean, norm_std,
                    donate=False, block_bytes=block_bytes)


@functools.partial(jax.jit, donate_argnums=(0,),
                   static_argnames=("norm_mean", "norm_std", "block_bytes"))
def waveform_forward_inplace(waveform, norm_mean=None, norm_std=None,
                             block_bytes=_TARGET_BLOCK_BYTES):
    """Same as waveform_forward, but donates the input HBM buffer and aliases
    it to the output (input array is consumed)."""
    return _forward(waveform, norm_mean, norm_std,
                    donate=True, block_bytes=block_bytes)


if __name__ == "__main__":
    # Module "parameters" (from __init__): sr, norm_mean, norm_std, patch_size.
    # No learnable weights; mean/std are deterministic config constants.
    SR = 16000
    NORM_MEAN = 0.25
    NORM_STD = 0.5
    PATCH_SIZE = (16, 16)  # stored config on the PyTorch module; unused in forward

    key = jax.random.PRNGKey(0)
    k0, k1, k2, k3 = jax.random.split(key, 4)

    def ref_forward(w):
        return (w[:, None, :] - NORM_MEAN) / NORM_STD

    # 1) Main path: z-normalization, aligned length.
    B, T = 2, 2048
    wav = jax.random.normal(k0, (B, T), dtype=jnp.float32)
    out = jax.block_until_ready(
        waveform_forward(wav, norm_mean=NORM_MEAN, norm_std=NORM_STD))
    assert out.shape == (B, 1, T), out.shape
    assert jnp.allclose(out, ref_forward(wav), atol=1e-6, rtol=1e-6)

    # 2) Ragged length with a multi-step grid and a masked boundary block
    #    (tiny block_bytes just to exercise the partial-block path at small shapes).
    T2 = 1000
    wav2 = jax.random.normal(k1, (B, T2), dtype=jnp.float32)
    out2 = jax.block_until_ready(
        waveform_forward(wav2, norm_mean=NORM_MEAN, norm_std=NORM_STD,
                         block_bytes=4096))
    assert out2.shape == (B, 1, T2), out2.shape
    assert jnp.allclose(out2, ref_forward(wav2), atol=1e-6, rtol=1e-6)

    # 3) Ragged prime length: no row-folding factor exists -> full-dim block path.
    T3 = 997
    wav3 = jax.random.normal(k2, (B, T3), dtype=jnp.float32)
    out3 = jax.block_until_ready(
        waveform_forward(wav3, norm_mean=NORM_MEAN, norm_std=NORM_STD))
    assert out3.shape == (B, 1, T3), out3.shape
    assert jnp.allclose(out3, ref_forward(wav3), atol=1e-6, rtol=1e-6)

    # 4) Donating / in-place variant: input HBM buffer is reused as the output.
    wav4 = jax.random.normal(k3, (B, T), dtype=jnp.float32)
    ref4 = jax.block_until_ready(ref_forward(wav4))   # compute BEFORE donating
    out4 = jax.block_until_ready(
        waveform_forward_inplace(wav4, norm_mean=NORM_MEAN, norm_std=NORM_STD))
    assert out4.shape == (B, 1, T), out4.shape
    assert jnp.allclose(out4, ref4, atol=1e-6, rtol=1e-6)

    # 5) No-normalization path: pure metadata unsqueeze, no kernel launch.
    out_id = jax.block_until_ready(waveform_forward(wav))
    assert out_id.shape == (B, 1, T)
    assert jnp.allclose(out_id, wav[:, None, :])

    print("KERNEL_OK")
</pallas_src>

<mosaic_0001>
module attributes {stable_mosaic.version = 11 : i64} {
  func.func @_znorm_kernel(%arg0: i32, %arg1: i32, %arg2: memref<8x512xf32, #tpu.memory_space<vmem>>, %arg3: memref<8x512xf32, #tpu.memory_space<vmem>>) attributes {dimension_semantics = [#tpu.dimension_semantics<parallel>, #tpu.dimension_semantics<parallel>], iteration_bounds = array<i64: 1, 1>, scalar_prefetch = 0 : i64, scratch_operands = 0 : i64, tpu.core_type = #tpu.core_type<tc>, window_params = [{transform_indices = @transform_0, window_bounds = array<i64: 8, 512>}, {transform_indices = @transform_1, window_bounds = array<i64: 8, 512>}]} {
    %c0 = arith.constant 0 : index
    %c0_0 = arith.constant 0 : index
    %0 = vector.load %arg2[%c0, %c0_0] : memref<8x512xf32, #tpu.memory_space<vmem>>, vector<8x512xf32>
    %cst = arith.constant 2.500000e-01 : f32
    %1 = vector.broadcast %cst : f32 to vector<8x512xf32>
    %2 = arith.subf %0, %1 : vector<8x512xf32>
    %cst_1 = arith.constant 5.000000e-01 : f32
    %3 = vector.broadcast %cst_1 : f32 to vector<8x512xf32>
    %4 = arith.divf %2, %3 : vector<8x512xf32>
    %c0_2 = arith.constant 0 : index
    %c0_3 = arith.constant 0 : index
    %5 = vector.load %arg3[%c0_2, %c0_3] : memref<8x512xf32, #tpu.memory_space<vmem>>, vector<8x512xf32>
    tpu.vector_store %arg3[%c0_2, %c0_3], %4 {strides = array<i32>} : memref<8x512xf32, #tpu.memory_space<vmem>>, vector<8x512xf32>,
    return
  }
  func.func @transform_0(%arg0: i32, %arg1: i32) -> (i32, i32) {
    %c0_i32 = arith.constant 0 : i32
    return %arg0, %arg1 : i32, i32
  }
  func.func @transform_1(%arg0: i32, %arg1: i32) -> (i32, i32) {
    %c0_i32 = arith.constant 0 : i32
    return %arg0, %arg1 : i32, i32
  }
}

</mosaic_0001>

<bundles_post_ra>
// kernel: waveform_forward.1
= control target key start
LH: loop header
LB: loop body
LE: loop exit
PB: predicated region body
PF: predicated region fallthrough
CT: control target
= control target key end

     0   :  { %s67_s0 = inlined_call_operand.vmem [shape: f32[8,512], index: 0, kind: input, shape index: {}]   ;;  %s68_s1 = inlined_call_operand.vmem [shape: f32[8,512], index: 1, kind: output, shape index: {}]  }
   0x1   :  { %v8_v0 = vld [vmem:[%s67_s0] sm:$0xff]  ;;  %v9_v1 = vld [vmem:[%s67_s0 + $0x8] sm:$0xff]  ;;  %v10_v2 = vld [vmem:[%s67_s0 + $0x10] sm:$0xff] }
   0x2   :  { %v29_v3 = vadd.f32 -0.25, %v8_v0  ;;  %v30_v4 = vadd.f32 -0.25, %v9_v1  ;;  %v31_v5 = vadd.f32 -0.25, %v10_v2  ;;  %v11_v6 = vld [vmem:[%s67_s0 + $0x18] sm:$0xff] }
   0x3   :  { %v32_v7 = vadd.f32 -0.25, %v11_v6 }
   0x4   :  { %v17_v8 = vmul.f32 2.0, %v29_v3  ;;  %v18_v9 = vmul.f32 2.0, %v30_v4  ;;  %v19_v10 = vmul.f32 2.0, %v31_v5 }
   0x5   :  { %v20_v11 = vmul.f32 2.0, %v32_v7 }
   0x6   :  { %21 = vst [vmem:[%s68_s1] sm:$0xff] %v17_v8  ;;  %22 = vst [vmem:[%s68_s1 + $0x8] sm:$0xff] %v18_v9 }
   0x7   :  { %23 = vst [vmem:[%s68_s1 + $0x10] sm:$0xff] %v19_v10  ;;  %24 = vst [vmem:[%s68_s1 + $0x18] sm:$0xff] %v20_v11 }

</bundles_post_ra>
